<compile_context>
chip_gen: v7x
topology: tpu7x:2x2x1
jax: 0.10.0
libtpu: 0.0.40
codegen_flags: <defaults>
</compile_context>

<pallas_src>
import jax
import jax.numpy as jnp
from jax.experimental import pallas as pl
from jax.experimental.pallas import tpu as pltpu


def _prod(xs):
    out = 1
    for v in xs:
        out *= int(v)
    return out


def _cdiv(a, b):
    return (a + b - 1) // b


def _divisors(n):
    ds = set()
    i = 1
    while i * i <= n:
        if n % i == 0:
            ds.add(i)
            ds.add(n // i)
        i += 1
    return sorted(ds)


def _chip_params():
    """Per-generation (tile_bytes, vmem_limit_bytes)."""
    try:
        info = pltpu.get_tpu_info()
        cap = int(getattr(info, "vmem_capacity_bytes", 0) or 0)
    except Exception:
        cap = 0
    if cap >= (120 << 20):
        # v5e / v6e: 128 MiB physical VMEM, 1 TensorCore -> big blocks.
        # 2x(16 MiB out + <=16 MiB in) = 64 MiB < 72 MiB scoped < 128 MiB phys.
        return 16 << 20, 72 << 20
    # v7x (64 MiB per TC) or unknown chip: conservative, safe everywhere.
    # 2x(8 MiB out + <=8 MiB in) = 32 MiB < 40 MiB scoped.
    return 8 << 20, 40 << 20


def _expand_kernel(x_ref, o_ref):
    # Whole hot path: broadcast the (possibly size-1-dim) source block across
    # the output block and store it.  Lane replication was resolved in the
    # wrapper, so this stays a pure broadcast-copy with wide stores.
    o_ref[...] = jnp.broadcast_to(x_ref[...], o_ref.shape).astype(o_ref.dtype)


def _resolve_expand_shape(x_shape, new_shape):
    """torch.Tensor.expand semantics: right-align dims, -1 keeps the input
    size, size-1 dims may be expanded, extra leading dims may be added."""
    new_shape = tuple(int(s) for s in new_shape)
    nd_out, nd_in = len(new_shape), len(x_shape)
    assert nd_out >= nd_in, "expand: new_shape must have >= ndim of input"
    out = []
    for i, s in enumerate(new_shape):
        j = i - (nd_out - nd_in)          # aligned input axis (<0: new leading dim)
        if s == -1:
            assert j >= 0, "expand: -1 not allowed for new leading dims"
            out.append(int(x_shape[j]))
        else:
            if j >= 0 and x_shape[j] != 1:
                assert x_shape[j] == s, "expand: cannot expand non-singleton dim"
            out.append(s)
    return tuple(out)


def _choose_blocks(shape, itemsize, tile_bytes):
    """Greedy innermost-first output block sizes under a byte budget.

    Honours the TPU BlockSpec rule (last two block dims multiple of
    (sublane, 128) or the full extent) using the dtype-native sublane multiple
    (8 for f32, 16 for bf16, 32 for int8/fp8), and reserves sublane room so a
    huge lane dim never starves the sublane dim (bounds VMEM overshoot)."""
    n = len(shape)
    m = 8 * max(1, 4 // itemsize)                 # dtype-native sublane multiple
    budget = max(tile_bytes // itemsize, 8 * 128)
    blocks = [1] * n
    rem = budget
    for ax in range(n - 1, -1, -1):
        full = int(shape[ax])
        if full <= 0:
            blocks[ax] = 1
            continue
        if ax == n - 1:
            cap = rem
            if n >= 2 and int(shape[ax - 1]) > 1:
                # leave room for one native tile's worth of sublanes
                cap = max(128, (rem // m // 128) * 128)
            b = full if full <= cap else max(128, (cap // 128) * 128)
        elif ax == n - 2:
            cap = max(rem, 1)
            if full <= cap or full <= m:
                b = full
            else:
                b = max(m, (cap // m) * m)
        else:
            b = min(full, max(rem, 1))
        blocks[ax] = b
        rem = max(1, rem // max(b, 1))
    return tuple(blocks)


def pallas_expand(x, new_shape, *, tile_bytes=None):
    """x.expand(new_shape) as a tiled Pallas TPU broadcast-copy kernel."""
    out_shape = _resolve_expand_shape(x.shape, new_shape)
    nd = len(out_shape)
    itemsize = jnp.dtype(x.dtype).itemsize

    if _prod(out_shape) == 0:
        return jnp.zeros(out_shape, x.dtype)

    default_tile, vmem_limit = _chip_params()
    if tile_bytes is None:
        tile_bytes = default_tile

    x_pad = (1,) * (nd - x.ndim) + tuple(int(d) for d in x.shape)
    xp = x.reshape(x_pad)

    out_bytes = _prod(out_shape) * itemsize
    in_bytes = _prod(x_pad) * itemsize
    budget_elems = max(tile_bytes // itemsize, 8 * 128)

    # --- canonicalise the trailing axes into a single lane-dense dimension ---
    # trailing run of "kept" axes (same size in input and output)
    pk = nd
    while pk > 0 and x_pad[pk - 1] == out_shape[pk - 1]:
        pk -= 1
    inner_keep = _prod(out_shape[pk:])
    # run of broadcast axes (input size 1, output > 1) immediately before it
    pb = pk
    while pb > 0 and x_pad[pb - 1] == 1 and out_shape[pb - 1] > 1:
        pb -= 1
    reps = _prod(out_shape[pb:pk])

    # Pre-replication cost bound: the wrapper jnp.tile is a separate,
    # un-hidden XLA op, so keep its traffic <= max(2 MiB, out/16).
    def _pretile_cost_ok(r):
        return in_bytes * r <= max(2 << 20, out_bytes // 16)

    # Already lane-dense -> pretile buys nothing, only costs bandwidth.
    lane_dense_already = (inner_keep >= 512 and inner_keep % 128 == 0)

    full_pretile = (
        reps > 1
        and not lane_dense_already
        and reps * inner_keep <= budget_elems
        and _pretile_cost_ok(reps)
    )

    # Partial replication: when full replication is too expensive but the
    # inner dim is narrow, replicate by the smallest divisor r0 of reps that
    # reaches >=512-wide lanes; reps//r0 stays as a broadcast grid axis.
    partial_r0 = 0
    if (not full_pretile and reps > 1 and not lane_dense_already
            and (inner_keep < 128 or inner_keep % 128 != 0)):
        lane_cap = max(512, budget_elems // 8)
        for r0 in _divisors(reps):
            if r0 <= 1 or r0 >= reps:
                continue
            width = r0 * inner_keep
            if width < 512:
                continue
            if width <= lane_cap and _pretile_cost_ok(r0):
                partial_r0 = r0
            break  # only the smallest adequate divisor is worth considering

    if full_pretile:
        inner = reps * inner_keep
        lead = x_pad[:pb]
        xp = jnp.tile(xp.reshape(lead + (1, inner_keep)),
                      (1,) * len(lead) + (reps, 1))
        xs_in = lead + (inner,)
        xs_out = tuple(out_shape[:pb]) + (inner,)
    elif partial_r0 > 1:
        inner = partial_r0 * inner_keep
        lead = x_pad[:pb]
        xp = jnp.tile(xp.reshape(lead + (1, inner_keep)),
                      (1,) * len(lead) + (partial_r0, 1))
        xs_in = lead + (1, inner)
        xs_out = tuple(out_shape[:pb]) + (reps // partial_r0, inner)
    elif pk < nd:
        # flatten just the trailing kept run (free, layout-preserving reshape)
        xs_in = x_pad[:pk] + (inner_keep,)
        xs_out = tuple(out_shape[:pk]) + (inner_keep,)
    else:
        xs_in = x_pad
        xs_out = tuple(out_shape)

    # keep the pallas arrays at least rank 2
    if len(xs_out) < 2:
        pad = 2 - len(xs_out)
        xs_in = (1,) * pad + tuple(xs_in)
        xs_out = (1,) * pad + tuple(xs_out)
    xp = xp.reshape(xs_in)

    n = len(xs_out)
    kept = [xs_in[i] == xs_out[i] for i in range(n)]

    # --- tiling: ~tile_bytes output blocks, greedy from the innermost axis ---
    blocks = _choose_blocks(xs_out, itemsize, tile_bytes)
    in_blocks = tuple(blocks[i] if kept[i] else 1 for i in range(n))

    trips = [_cdiv(int(xs_out[ax]), blocks[ax]) for ax in range(n)]
    gridded = [ax for ax in range(n) if trips[ax] > 1]
    # Kept axes outermost (so broadcast axes are innermost and the re-used
    # source block's DMA is elided between consecutive steps); within each
    # class, the largest trip count goes first so grid dim 0 is big (balanced
    # megacore sharding on v7x).
    gridded.sort(key=lambda ax: (0 if kept[ax] else 1, -trips[ax], ax))
    grid = tuple(trips[ax] for ax in gridded)

    def out_index_map(*g):
        idx = [0] * n
        for gi, ax in zip(g, gridded):
            idx[ax] = gi
        return tuple(idx)

    def in_index_map(*g):
        idx = [0] * n
        for gi, ax in zip(g, gridded):
            idx[ax] = gi if kept[ax] else 0
        return tuple(idx)

    compiler_kwargs = dict(vmem_limit_bytes=vmem_limit)
    if grid:
        # Every output block is written exactly once -> all grid axes are
        # independent; "parallel" lets the grid shard across both TensorCores
        # on v7x.
        compiler_kwargs["dimension_semantics"] = ("parallel",) * len(grid)

    cost = pl.CostEstimate(
        flops=0,
        transcendentals=0,
        bytes_accessed=_prod(xs_out) * itemsize + _prod(xs_in) * itemsize,
    )

    y = pl.pallas_call(
        _expand_kernel,
        out_shape=jax.ShapeDtypeStruct(tuple(xs_out), x.dtype),
        grid=grid,
        in_specs=[pl.BlockSpec(in_blocks, in_index_map)],
        out_specs=pl.BlockSpec(tuple(blocks), out_index_map),
        compiler_params=pltpu.CompilerParams(**compiler_kwargs),
        cost_estimate=cost,
    )(xp)
    return y.reshape(out_shape)


if __name__ == "__main__":
    key = jax.random.PRNGKey(0)
    k0, k1, k2, k3 = jax.random.split(key, 4)

    # Primary example, matching the module's forward:
    #   x: (4, 1, 16) -> x.expand(2, 4, 16, -1) == (2, 4, 16, 16)
    x = jax.random.normal(k0, (4, 1, 16), dtype=jnp.float32)
    new_shape = (2, 4, 16, -1)
    y = jax.block_until_ready(pallas_expand(x, new_shape))
    ref = jnp.broadcast_to(x, (2, 4, 16, 16))
    assert y.shape == ref.shape and y.dtype == x.dtype
    assert bool(jnp.array_equal(y, ref)), "primary expand mismatch"

    # Full-pretile + multi-axis grid (kept and broadcast grid axes), tiny tile
    # budget forces a real multi-step grid.
    x2 = jax.random.normal(k1, (1, 1, 128, 1), dtype=jnp.float32)
    y2 = jax.block_until_ready(
        pallas_expand(x2, (4, 8, 128, 256), tile_bytes=64 * 1024))
    assert bool(jnp.array_equal(y2, jnp.broadcast_to(x2, (4, 8, 128, 256))))

    # Middle-axis broadcast where pre-replication is too expensive: the kernel
    # broadcasts across a middle axis; lane dim stays the full kept 256.
    x3 = jax.random.normal(k2, (128, 1, 256), dtype=jnp.float32)
    y3 = jax.block_until_ready(
        pallas_expand(x3, (128, 32, 256), tile_bytes=256 * 1024))
    assert bool(jnp.array_equal(y3, jnp.broadcast_to(x3, (128, 32, 256))))

    # Partial pre-replication path: narrow inner dim (8), full replication
    # exceeds the block budget, so r0=64 gives a 512-wide lane dim and the
    # remaining broadcast factor stays as an innermost grid axis.
    x4 = jax.random.normal(k3, (8, 1, 8), dtype=jnp.float32)
    y4 = jax.block_until_ready(
        pallas_expand(x4, (8, 512, 8), tile_bytes=8 * 1024))
    assert bool(jnp.array_equal(y4, jnp.broadcast_to(x4, (8, 512, 8))))

    print("KERNEL_OK")
</pallas_src>

<mosaic_0001>
module attributes {stable_mosaic.version = 11 : i64} {
  func.func @_expand_kernel(%arg0: memref<1x4x256xf32, #tpu.memory_space<vmem>>, %arg1: memref<2x4x256xf32, #tpu.memory_space<vmem>>) attributes {dimension_semantics = [], scalar_prefetch = 0 : i64, scratch_operands = 0 : i64, tpu.core_type = #tpu.core_type<tc>} {
    %c0 = arith.constant 0 : index
    %c0_0 = arith.constant 0 : index
    %c0_1 = arith.constant 0 : index
    %0 = vector.load %arg0[%c0, %c0_0, %c0_1] : memref<1x4x256xf32, #tpu.memory_space<vmem>>, vector<1x4x256xf32>
    %1 = vector.shape_cast %0 : vector<1x4x256xf32> to vector<1x4x256xf32>
    %2 = vector.broadcast %1 : vector<1x4x256xf32> to vector<2x4x256xf32>
    %c0_2 = arith.constant 0 : index
    %c0_3 = arith.constant 0 : index
    %c0_4 = arith.constant 0 : index
    %3 = vector.load %arg1[%c0_2, %c0_3, %c0_4] : memref<2x4x256xf32, #tpu.memory_space<vmem>>, vector<2x4x256xf32>
    tpu.vector_store %arg1[%c0_2, %c0_3, %c0_4], %2 {strides = array<i32>} : memref<2x4x256xf32, #tpu.memory_space<vmem>>, vector<2x4x256xf32>,
    return
  }
}

</mosaic_0001>

<bundles_post_ra>
// kernel: tpu_custom_call.1
= control target key start
LH: loop header
LB: loop body
LE: loop exit
PB: predicated region body
PF: predicated region fallthrough
CT: control target
= control target key end

     0   :  { %6 = vsyncpa [#allocation3], 0  ;;  %s131_s0 = inlined_call_operand.hbm [shape: f32[1,4,256], index: 0, kind: input, shape index: {}]   ;;  %s132_s1 = inlined_call_operand.hbm [shape: f32[2,4,256], index: 1, kind: output, shape index: {}]  }
   0x1   :  { %7 = vsyncpa [#allocation4], 0  ;;  %s93_s6 = smov [#allocation2]   ;;  %s45_s10 = scalar_lea.hbm %s131_s0, 128 }
   0x2   :  { %s14_s7 = sshll.u32 %s93_s6, 4  ;;  %p46_p0 = scmp.ne.s32.totalorder %s131_s0, %s45_s10  ;;  %s15_s7 = int_to_ptr.vmem [resolvable:$true] %s14_s7 }
   0x3   :  { %p49_p1 = scmp.lt.u32.totalorder %s45_s10, %s131_s0 }
   0x5   :  { %p51_p2 = pnand %p49_p1, %p46_p0 }
   0x7   :  { %54 = shalt.err (!%p51_p2)
}
   0x8   :  { %s55_s15 = scalar_lea.vmem %s15_s7, 128  ;;  %p60_p4 = scmp.lt.s32.totalorder %s15_s7, %s15_s7 }
   0x9   :  { %p56_p3 = scmp.ne.s32.totalorder %s15_s7, %s55_s15  ;;  %p61_p5 = scmp.lt.s32.totalorder %s55_s15, %s55_s15 }
   0xb   :  { %p62_p6 = por %p61_p5, %p60_p4 }
   0xd   :  { %p63_p7 = pnand %p62_p6, %p56_p3 }
   0xf   :  { %66 = shalt.err (!%p63_p7)
}
  0x10   :  { %17 = dma.hbm_to_vmem [thread:$0]  %s131_s0, 128, %s15_s7, [#allocation3]  }
  0x11   :  { %89 = dma.done.wait [#allocation3], 128  }
  0x12   :  { %90 = vsyncadd [#allocation3], 4294967168  ;;  %s94_s18 = smov [#allocation5]   ;;  %v21_v0 = vld [vmem:[#allocation2] sm:$0xff] }
  0x13   :  { %s29_s19 = sshll.u32 %s94_s18, 4  ;;  %22 = vst [vmem:[#allocation5] sm:$0xff] %v21_v0  ;;  %23 = vst [vmem:[#allocation5 + $0x8] sm:$0xff] %v21_v0  ;;  %s30_s19 = int_to_ptr.vmem [resolvable:$true] %s29_s19 }
  0x14   :  { %s67_s20 = scalar_lea.vmem %s30_s19, 256  ;;  %p72_p9 = scmp.lt.s32.totalorder %s30_s19, %s30_s19 }
  0x15   :  { %p68_p8 = scmp.ne.s32.totalorder %s30_s19, %s67_s20  ;;  %p73_p10 = scmp.lt.s32.totalorder %s67_s20, %s67_s20 }
  0x17   :  { %p74_p11 = por %p73_p10, %p72_p9 }
  0x19   :  { %p75_p12 = pnand %p74_p11, %p68_p8 }
  0x1b   :  { %78 = shalt.err (!%p75_p12)
}
  0x1c   :  { %s79_s23 = scalar_lea.hbm %s132_s1, 256 }
  0x1d   :  { %p80_p13 = scmp.ne.s32.totalorder %s132_s1, %s79_s23  ;;  %p83_p0 = scmp.lt.u32.totalorder %s79_s23, %s132_s1 }
  0x1f   :  { %p85_p1 = pnand %p83_p0, %p80_p13 }
  0x21   :  { %88 = shalt.err (!%p85_p1)
}
  0x22   :  { %s95_s27 = smov 128   ;;  %s96_s28 = smov 8  }
  0x23   :  { %35 = dma.vmem_to_hbm [thread:$0]  %s30_s19, 256, %s132_s1, [#allocation4], %s95_s27, %s95_s27, %s96_s28  }
  0x24   :  { %91 = dma.done.wait [#allocation4], 256  }
  0x25   :  { %92 = vsyncadd [#allocation4], 4294967040 }
  0x26   :  { %39 = vsyncpa [#allocation3], 1 }
  0x27   :  { %40 = vsyncpa [#allocation4], 1 }

</bundles_post_ra>
